<compile_context>
chip_gen: v7x
topology: tpu7x:2x2x1
jax: 0.10.0
libtpu: 0.0.40
codegen_flags: <defaults>
</compile_context>

<pallas_src>
import functools

import jax
import jax.numpy as jnp
from jax.experimental import pallas as pl
from jax.experimental.pallas import tpu as pltpu


def _grid_sample_kernel(pos_ref, grid_ref, out_ref, *, C, Nx, Ny, Nz):
    # pos_ref : (3, TP)            continuous grid coords (x, y, z rows)
    # grid_ref: (Ny*Nx*C, Nz)      grid rows ordered j-major, then i, then c
    # out_ref : (C, TP)
    tp = out_ref.shape[-1]
    x = pos_ref[0:1, :]                                   # (1, TP)
    y = pos_ref[1:2, :]
    z = pos_ref[2:3, :]

    # z-axis tent weights (Nz, TP): one iota + a few VPU passes over a small slab.
    kz = jax.lax.broadcasted_iota(jnp.int32, (Nz, tp), 0).astype(jnp.float32)
    tz = jnp.maximum(0.0, 1.0 - jnp.abs(z - kz))          # (Nz, TP)

    # MXU: (Ny*Nx*C, Nz) @ (Nz, TP) -> (Ny*Nx*C, TP), f32 accumulate.
    # (Default f32 MXU path already met the 1e-5 tolerance vs. the reference.)
    b = jnp.dot(grid_ref[...], tz, preferred_element_type=jnp.float32)

    # y reduction (VPU): contiguous static row slices, weight rows broadcast from
    # a single sublane.  Initialize with the j=0 term to save one add pass.
    rows_j = Nx * C
    ty0 = jnp.maximum(0.0, 1.0 - jnp.abs(y))              # (1, TP)
    acc = b[0:rows_j, :] * ty0                             # (Nx*C, TP)
    for j in range(1, Ny):
        ty_j = jnp.maximum(0.0, 1.0 - jnp.abs(y - float(j)))
        acc = acc + b[j * rows_j:(j + 1) * rows_j, :] * ty_j

    # x reduction (VPU): C-row slices.
    tx0 = jnp.maximum(0.0, 1.0 - jnp.abs(x))               # (1, TP)
    out = acc[0:C, :] * tx0                                 # (C, TP)
    for i in range(1, Nx):
        tx_i = jnp.maximum(0.0, 1.0 - jnp.abs(x - float(i)))
        out = out + acc[i * C:(i + 1) * C, :] * tx_i

    out_ref[...] = out.astype(out_ref.dtype)


def _num_tensorcores():
    """Best-effort TensorCore count per chip (v7x=2, v5e/v6e=1)."""
    try:
        info = pltpu.get_tpu_info()
    except Exception:
        return 1
    for attr in ("num_cores", "num_tensorcores", "tensorcore_count",
                 "cores_per_chip", "num_cores_per_chip"):
        v = getattr(info, attr, None)
        if isinstance(v, int) and v > 0:
            return v
    return 1


def _select_tile_p(P, tile_p, num_cores):
    """Lane tile (multiple of 128).

    Single-TC chips (v5e/v6e): keep one full-width step for small P (the grid is a
    serial loop there, splitting only adds per-step overhead).  Multi-TC chips
    (v7x): ensure >= num_cores steps and prefer a step count that is a multiple of
    num_cores so no core idles on the tail step.
    """
    tile_p = max(128, (int(tile_p) // 128) * 128)
    p128 = ((P + 127) // 128) * 128
    tile_p = min(tile_p, p128)
    if num_cores >= 2 and p128 > 128:
        while tile_p > 128 and (p128 + tile_p - 1) // tile_p < num_cores:
            tile_p -= 128
        t = tile_p
        while t >= 128:
            if ((p128 + t - 1) // t) % num_cores == 0:
                tile_p = t
                break
            t -= 128
    return tile_p


def dense_grid_forward(xyz, grid, xyz_min, xyz_max, transpose=True, *, tile_p=512):
    """JAX/Pallas equivalent of DenseGrid.forward.

    xyz:  (..., 3) world coordinates
    grid: (1, C, Nx, Ny, Nz)   (NCDHW, same layout as the PyTorch parameter)
    """
    shape = xyz.shape[:-1]
    C = int(grid.shape[1])
    Nx, Ny, Nz = int(grid.shape[2]), int(grid.shape[3]), int(grid.shape[4])

    pts = xyz.reshape(-1, 3).astype(jnp.float32)
    P = pts.shape[0]

    # align_corners=True: normalized [0, 1] maps linearly onto [0, N-1].
    lo = jnp.asarray(xyz_min, jnp.float32)
    hi = jnp.asarray(xyz_max, jnp.float32)
    sizes = jnp.array([Nx, Ny, Nz], jnp.float32)
    pos = (pts - lo) / (hi - lo) * (sizes - 1.0)                     # (P, 3)

    num_cores = _num_tensorcores()
    tile_p = _select_tile_p(P, tile_p, num_cores)
    Ppad = ((P + tile_p - 1) // tile_p) * tile_p
    num_steps = Ppad // tile_p

    # Lane-dense (3, Ppad).  Tail points are padded with an out-of-range coordinate:
    # all cell coordinates are >= 0, so any pad value <= -1.0 zeroes every tent
    # weight (results are sliced off anyway).
    pad_coord = -2.0
    assert pad_coord <= -1.0, "pad coordinate must be <= -1 so tent weights vanish"
    pos_t = jnp.pad(pos, ((0, Ppad - P), (0, 0)), constant_values=pad_coord).T

    # Grid rows ordered j-major, then i, then c: row = j*(Nx*C) + i*C + c, so the
    # in-kernel y- and x-reductions are contiguous static row slices.
    grid_r = jnp.transpose(grid[0].astype(jnp.float32), (2, 1, 0, 3))
    grid_r = grid_r.reshape(Ny * Nx * C, Nz)

    kernel = functools.partial(_grid_sample_kernel, C=C, Nx=Nx, Ny=Ny, Nz=Nz)

    out = pl.pallas_call(
        kernel,
        out_shape=jax.ShapeDtypeStruct((C, Ppad), jnp.float32),
        grid_spec=pltpu.PrefetchScalarGridSpec(
            num_scalar_prefetch=0,
            grid=(num_steps,),
            in_specs=[
                # Query coords: tiled along the point (lane) axis.
                pl.BlockSpec((3, tile_p), lambda i: (0, i)),
                # Grid parameter: resident across all steps and never re-fetched,
                # so single-buffer it (halves its VMEM footprint).
                pl.BlockSpec((Ny * Nx * C, Nz), lambda i: (0, 0),
                             pipeline_mode=pl.Buffered(1)),
            ],
            out_specs=pl.BlockSpec((C, tile_p), lambda i: (0, i)),
        ),
        compiler_params=pltpu.CompilerParams(
            dimension_semantics=("parallel",),
            # Modest explicit scoped-VMEM budget: safe on v5e/v6e (128 MiB physical)
            # and within v7x's 64 MiB physical / 32 MiB scoped default.  Actual
            # footprint here is ~1-2 MiB even at tile_p=1024.
            vmem_limit_bytes=32 * 1024 * 1024,
        ),
    )(pos_t, grid_r)

    out = out[:, :P]                       # (C, P) — already channel-major
    if transpose:
        res = out.T.reshape(*shape, C)
        if C == 1:
            res = res[..., 0]
    else:
        res = out.reshape(C, *shape)
    return res


def dense_grid_forward_ref(xyz, grid, xyz_min, xyz_max):
    """Pure-JAX reference (same semantics as F.grid_sample trilinear, align_corners=True)."""
    C = grid.shape[1]
    Nx, Ny, Nz = grid.shape[2], grid.shape[3], grid.shape[4]
    shape = xyz.shape[:-1]
    pts = xyz.reshape(-1, 3).astype(jnp.float32)
    sizes = jnp.array([Nx, Ny, Nz], jnp.float32)
    pos = (pts - xyz_min) / (xyz_max - xyz_min) * (sizes - 1.0)
    p0 = jnp.floor(pos).astype(jnp.int32)
    f = pos - p0
    g = grid[0].astype(jnp.float32)  # (C, Nx, Ny, Nz)
    out = jnp.zeros((pts.shape[0], C), jnp.float32)
    lims = jnp.array([Nx, Ny, Nz], jnp.int32)
    for dx in (0, 1):
        for dy in (0, 1):
            for dz in (0, 1):
                d = jnp.array([dx, dy, dz], jnp.int32)
                idx = p0 + d
                w = jnp.prod(jnp.where(d == 1, f, 1.0 - f), axis=-1)
                valid = jnp.all((idx >= 0) & (idx < lims), axis=-1)
                idc = jnp.clip(idx, 0, lims - 1)
                vals = g[:, idc[:, 0], idc[:, 1], idc[:, 2]]  # (C, P)
                out = out + (jnp.where(valid, w, 0.0) * vals).T
    out = out.reshape(*shape, C)
    if C == 1:
        out = out[..., 0]
    return out


if __name__ == "__main__":
    key = jax.random.PRNGKey(0)
    k_grid, k_xyz, k_xyz2, k_grid1 = jax.random.split(key, 4)

    channels = 4
    world_size = (8, 8, 8)                      # (Nx, Ny, Nz)
    xyz_min = jnp.array([-1.0, -1.0, -1.0], jnp.float32)
    xyz_max = jnp.array([1.0, 1.0, 1.0], jnp.float32)

    # nn.Parameter(torch.zeros([1, C, *world_size])) -- same shape, but filled with
    # deterministic random values so the output is non-trivial.
    grid_param = jax.random.normal(
        k_grid, (1, channels, *world_size), dtype=jnp.float32)

    # Small query batch inside the bounding box, shape (2, 50, 3).
    xyz = jax.random.uniform(
        k_xyz, (2, 50, 3), dtype=jnp.float32, minval=-0.95, maxval=0.95)

    out = dense_grid_forward(xyz, grid_param, xyz_min, xyz_max, transpose=True)
    out = jax.block_until_ready(out)
    ref = dense_grid_forward_ref(xyz, grid_param, xyz_min, xyz_max)
    assert out.shape == (2, 50, channels), out.shape
    assert jnp.allclose(out, ref, rtol=1e-5, atol=1e-5), (
        float(jnp.max(jnp.abs(out - ref))))

    # transpose=False path.
    out_nt = dense_grid_forward(xyz, grid_param, xyz_min, xyz_max, transpose=False)
    out_nt = jax.block_until_ready(out_nt)
    assert out_nt.shape == (channels, 2, 50), out_nt.shape
    assert jnp.allclose(out_nt, jnp.transpose(ref, (2, 0, 1)), rtol=1e-5, atol=1e-5)

    # Larger batch: multiple grid steps, padded tail, and some out-of-box points
    # (exercises zeros padding).
    xyz2 = jax.random.uniform(
        k_xyz2, (4, 200, 3), dtype=jnp.float32, minval=-1.3, maxval=1.3)
    out2 = jax.block_until_ready(
        dense_grid_forward(xyz2, grid_param, xyz_min, xyz_max, transpose=True))
    ref2 = dense_grid_forward_ref(xyz2, grid_param, xyz_min, xyz_max)
    assert out2.shape == (4, 200, channels), out2.shape
    assert jnp.allclose(out2, ref2, rtol=1e-5, atol=1e-5), (
        float(jnp.max(jnp.abs(out2 - ref2))))

    # channels == 1 path (output squeeze).
    grid1 = jax.random.normal(k_grid1, (1, 1, *world_size), dtype=jnp.float32)
    out1 = jax.block_until_ready(
        dense_grid_forward(xyz, grid1, xyz_min, xyz_max, transpose=True))
    ref1 = dense_grid_forward_ref(xyz, grid1, xyz_min, xyz_max)
    assert out1.shape == (2, 50), out1.shape
    assert jnp.allclose(out1, ref1, rtol=1e-5, atol=1e-5)

    print("KERNEL_OK")
</pallas_src>

<mosaic_0001>
module attributes {stable_mosaic.version = 11 : i64} {
  func.func @_grid_sample_kernel(%arg0: i32, %arg1: memref<3x128xf32, #tpu.memory_space<vmem>>, %arg2: memref<256x8xf32, #tpu.memory_space<vmem>>, %arg3: memref<4x128xf32, #tpu.memory_space<vmem>>) attributes {dimension_semantics = [#tpu.dimension_semantics<parallel>], iteration_bounds = array<i64: 1>, scalar_prefetch = 0 : i64, scratch_operands = 0 : i64, tpu.core_type = #tpu.core_type<tc>, window_params = [{transform_indices = @transform_0, window_bounds = array<i64: 3, 128>}, {pipeline_mode = #tpu.pipeline_mode<synchronous>, transform_indices = @transform_1, window_bounds = array<i64: 256, 8>}, {transform_indices = @transform_2, window_bounds = array<i64: 4, 128>}]} {
    %c0 = arith.constant 0 : index
    %c0_0 = arith.constant 0 : index
    %0 = vector.load %arg1[%c0, %c0_0] : memref<3x128xf32, #tpu.memory_space<vmem>>, vector<1x128xf32>
    %c1 = arith.constant 1 : index
    %c0_1 = arith.constant 0 : index
    %1 = vector.load %arg1[%c1, %c0_1] : memref<3x128xf32, #tpu.memory_space<vmem>>, vector<1x128xf32>
    %c2 = arith.constant 2 : index
    %c0_2 = arith.constant 0 : index
    %2 = vector.load %arg1[%c2, %c0_2] : memref<3x128xf32, #tpu.memory_space<vmem>>, vector<1x128xf32>
    %3 = tpu.iota {dimensions = array<i32: 0>} : vector<8x128xi32>
    %4 = arith.sitofp %3 : vector<8x128xi32> to vector<8x128xf32>
    %5 = vector.broadcast %2 : vector<1x128xf32> to vector<8x128xf32>
    %6 = arith.subf %5, %4 : vector<8x128xf32>
    %7 = math.absf %6 : vector<8x128xf32>
    %cst = arith.constant 1.000000e+00 : f32
    %8 = vector.broadcast %cst : f32 to vector<8x128xf32>
    %9 = arith.subf %8, %7 : vector<8x128xf32>
    %cst_3 = arith.constant 0.000000e+00 : f32
    %10 = vector.broadcast %cst_3 : f32 to vector<8x128xf32>
    %11 = arith.maximumf %10, %9 : vector<8x128xf32>
    %c0_4 = arith.constant 0 : index
    %c0_5 = arith.constant 0 : index
    %12 = vector.load %arg2[%c0_4, %c0_5] : memref<256x8xf32, #tpu.memory_space<vmem>>, vector<256x8xf32>
    %cst_6 = arith.constant dense<0.000000e+00> : vector<256x128xf32>
    %13 = tpu.matmul %12, %11, %cst_6 {dimension_numbers = #tpu.dot_dimension_numbers<[1], [0], [0], [1], [0, 0, 1, 1], [], []>} : vector<256x8xf32>, vector<8x128xf32>, vector<256x128xf32> -> vector<256x128xf32>
    %14 = math.absf %1 : vector<1x128xf32>
    %cst_7 = arith.constant 1.000000e+00 : f32
    %15 = vector.broadcast %cst_7 : f32 to vector<1x128xf32>
    %16 = arith.subf %15, %14 : vector<1x128xf32>
    %cst_8 = arith.constant 0.000000e+00 : f32
    %17 = vector.broadcast %cst_8 : f32 to vector<1x128xf32>
    %18 = arith.maximumf %17, %16 : vector<1x128xf32>
    %19 = vector.extract_strided_slice %13 {offsets = [0, 0], sizes = [32, 128], strides = [1, 1]} : vector<256x128xf32> to vector<32x128xf32>
    %20 = vector.broadcast %18 : vector<1x128xf32> to vector<32x128xf32>
    %21 = arith.mulf %19, %20 : vector<32x128xf32>
    %cst_9 = arith.constant 1.000000e+00 : f32
    %22 = vector.broadcast %cst_9 : f32 to vector<1x128xf32>
    %23 = arith.subf %1, %22 : vector<1x128xf32>
    %24 = math.absf %23 : vector<1x128xf32>
    %cst_10 = arith.constant 1.000000e+00 : f32
    %25 = vector.broadcast %cst_10 : f32 to vector<1x128xf32>
    %26 = arith.subf %25, %24 : vector<1x128xf32>
    %cst_11 = arith.constant 0.000000e+00 : f32
    %27 = vector.broadcast %cst_11 : f32 to vector<1x128xf32>
    %28 = arith.maximumf %27, %26 : vector<1x128xf32>
    %29 = vector.extract_strided_slice %13 {offsets = [32, 0], sizes = [32, 128], strides = [1, 1]} : vector<256x128xf32> to vector<32x128xf32>
    %30 = vector.broadcast %28 : vector<1x128xf32> to vector<32x128xf32>
    %31 = arith.mulf %29, %30 : vector<32x128xf32>
    %32 = arith.addf %21, %31 : vector<32x128xf32>
    %cst_12 = arith.constant 2.000000e+00 : f32
    %33 = vector.broadcast %cst_12 : f32 to vector<1x128xf32>
    %34 = arith.subf %1, %33 : vector<1x128xf32>
    %35 = math.absf %34 : vector<1x128xf32>
    %cst_13 = arith.constant 1.000000e+00 : f32
    %36 = vector.broadcast %cst_13 : f32 to vector<1x128xf32>
    %37 = arith.subf %36, %35 : vector<1x128xf32>
    %cst_14 = arith.constant 0.000000e+00 : f32
    %38 = vector.broadcast %cst_14 : f32 to vector<1x128xf32>
    %39 = arith.maximumf %38, %37 : vector<1x128xf32>
    %40 = vector.extract_strided_slice %13 {offsets = [64, 0], sizes = [32, 128], strides = [1, 1]} : vector<256x128xf32> to vector<32x128xf32>
    %41 = vector.broadcast %39 : vector<1x128xf32> to vector<32x128xf32>
    %42 = arith.mulf %40, %41 : vector<32x128xf32>
    %43 = arith.addf %32, %42 : vector<32x128xf32>
    %cst_15 = arith.constant 3.000000e+00 : f32
    %44 = vector.broadcast %cst_15 : f32 to vector<1x128xf32>
    %45 = arith.subf %1, %44 : vector<1x128xf32>
    %46 = math.absf %45 : vector<1x128xf32>
    %cst_16 = arith.constant 1.000000e+00 : f32
    %47 = vector.broadcast %cst_16 : f32 to vector<1x128xf32>
    %48 = arith.subf %47, %46 : vector<1x128xf32>
    %cst_17 = arith.constant 0.000000e+00 : f32
    %49 = vector.broadcast %cst_17 : f32 to vector<1x128xf32>
    %50 = arith.maximumf %49, %48 : vector<1x128xf32>
    %51 = vector.extract_strided_slice %13 {offsets = [96, 0], sizes = [32, 128], strides = [1, 1]} : vector<256x128xf32> to vector<32x128xf32>
    %52 = vector.broadcast %50 : vector<1x128xf32> to vector<32x128xf32>
    %53 = arith.mulf %51, %52 : vector<32x128xf32>
    %54 = arith.addf %43, %53 : vector<32x128xf32>
    %cst_18 = arith.constant 4.000000e+00 : f32
    %55 = vector.broadcast %cst_18 : f32 to vector<1x128xf32>
    %56 = arith.subf %1, %55 : vector<1x128xf32>
    %57 = math.absf %56 : vector<1x128xf32>
    %cst_19 = arith.constant 1.000000e+00 : f32
    %58 = vector.broadcast %cst_19 : f32 to vector<1x128xf32>
    %59 = arith.subf %58, %57 : vector<1x128xf32>
    %cst_20 = arith.constant 0.000000e+00 : f32
    %60 = vector.broadcast %cst_20 : f32 to vector<1x128xf32>
    %61 = arith.maximumf %60, %59 : vector<1x128xf32>
    %62 = vector.extract_strided_slice %13 {offsets = [128, 0], sizes = [32, 128], strides = [1, 1]} : vector<256x128xf32> to vector<32x128xf32>
    %63 = vector.broadcast %61 : vector<1x128xf32> to vector<32x128xf32>
    %64 = arith.mulf %62, %63 : vector<32x128xf32>
    %65 = arith.addf %54, %64 : vector<32x128xf32>
    %cst_21 = arith.constant 5.000000e+00 : f32
    %66 = vector.broadcast %cst_21 : f32 to vector<1x128xf32>
    %67 = arith.subf %1, %66 : vector<1x128xf32>
    %68 = math.absf %67 : vector<1x128xf32>
    %cst_22 = arith.constant 1.000000e+00 : f32
    %69 = vector.broadcast %cst_22 : f32 to vector<1x128xf32>
    %70 = arith.subf %69, %68 : vector<1x128xf32>
    %cst_23 = arith.constant 0.000000e+00 : f32
    %71 = vector.broadcast %cst_23 : f32 to vector<1x128xf32>
    %72 = arith.maximumf %71, %70 : vector<1x128xf32>
    %73 = vector.extract_strided_slice %13 {offsets = [160, 0], sizes = [32, 128], strides = [1, 1]} : vector<256x128xf32> to vector<32x128xf32>
    %74 = vector.broadcast %72 : vector<1x128xf32> to vector<32x128xf32>
    %75 = arith.mulf %73, %74 : vector<32x128xf32>
    %76 = arith.addf %65, %75 : vector<32x128xf32>
    %cst_24 = arith.constant 6.000000e+00 : f32
    %77 = vector.broadcast %cst_24 : f32 to vector<1x128xf32>
    %78 = arith.subf %1, %77 : vector<1x128xf32>
    %79 = math.absf %78 : vector<1x128xf32>
    %cst_25 = arith.constant 1.000000e+00 : f32
    %80 = vector.broadcast %cst_25 : f32 to vector<1x128xf32>
    %81 = arith.subf %80, %79 : vector<1x128xf32>
    %cst_26 = arith.constant 0.000000e+00 : f32
    %82 = vector.broadcast %cst_26 : f32 to vector<1x128xf32>
    %83 = arith.maximumf %82, %81 : vector<1x128xf32>
    %84 = vector.extract_strided_slice %13 {offsets = [192, 0], sizes = [32, 128], strides = [1, 1]} : vector<256x128xf32> to vector<32x128xf32>
    %85 = vector.broadcast %83 : vector<1x128xf32> to vector<32x128xf32>
    %86 = arith.mulf %84, %85 : vector<32x128xf32>
    %87 = arith.addf %76, %86 : vector<32x128xf32>
    %cst_27 = arith.constant 7.000000e+00 : f32
    %88 = vector.broadcast %cst_27 : f32 to vector<1x128xf32>
    %89 = arith.subf %1, %88 : vector<1x128xf32>
    %90 = math.absf %89 : vector<1x128xf32>
    %cst_28 = arith.constant 1.000000e+00 : f32
    %91 = vector.broadcast %cst_28 : f32 to vector<1x128xf32>
    %92 = arith.subf %91, %90 : vector<1x128xf32>
    %cst_29 = arith.constant 0.000000e+00 : f32
    %93 = vector.broadcast %cst_29 : f32 to vector<1x128xf32>
    %94 = arith.maximumf %93, %92 : vector<1x128xf32>
    %95 = vector.extract_strided_slice %13 {offsets = [224, 0], sizes = [32, 128], strides = [1, 1]} : vector<256x128xf32> to vector<32x128xf32>
    %96 = vector.broadcast %94 : vector<1x128xf32> to vector<32x128xf32>
    %97 = arith.mulf %95, %96 : vector<32x128xf32>
    %98 = arith.addf %87, %97 : vector<32x128xf32>
    %99 = math.absf %0 : vector<1x128xf32>
    %cst_30 = arith.constant 1.000000e+00 : f32
    %100 = vector.broadcast %cst_30 : f32 to vector<1x128xf32>
    %101 = arith.subf %100, %99 : vector<1x128xf32>
    %cst_31 = arith.constant 0.000000e+00 : f32
    %102 = vector.broadcast %cst_31 : f32 to vector<1x128xf32>
    %103 = arith.maximumf %102, %101 : vector<1x128xf32>
    %104 = vector.extract_strided_slice %98 {offsets = [0, 0], sizes = [4, 128], strides = [1, 1]} : vector<32x128xf32> to vector<4x128xf32>
    %105 = vector.broadcast %103 : vector<1x128xf32> to vector<4x128xf32>
    %106 = arith.mulf %104, %105 : vector<4x128xf32>
    %cst_32 = arith.constant 1.000000e+00 : f32
    %107 = vector.broadcast %cst_32 : f32 to vector<1x128xf32>
    %108 = arith.subf %0, %107 : vector<1x128xf32>
    %109 = math.absf %108 : vector<1x128xf32>
    %cst_33 = arith.constant 1.000000e+00 : f32
    %110 = vector.broadcast %cst_33 : f32 to vector<1x128xf32>
    %111 = arith.subf %110, %109 : vector<1x128xf32>
    %cst_34 = arith.constant 0.000000e+00 : f32
    %112 = vector.broadcast %cst_34 : f32 to vector<1x128xf32>
    %113 = arith.maximumf %112, %111 : vector<1x128xf32>
    %114 = vector.extract_strided_slice %98 {offsets = [4, 0], sizes = [4, 128], strides = [1, 1]} : vector<32x128xf32> to vector<4x128xf32>
    %115 = vector.broadcast %113 : vector<1x128xf32> to vector<4x128xf32>
    %116 = arith.mulf %114, %115 : vector<4x128xf32>
    %117 = arith.addf %106, %116 : vector<4x128xf32>
    %cst_35 = arith.constant 2.000000e+00 : f32
    %118 = vector.broadcast %cst_35 : f32 to vector<1x128xf32>
    %119 = arith.subf %0, %118 : vector<1x128xf32>
    %120 = math.absf %119 : vector<1x128xf32>
    %cst_36 = arith.constant 1.000000e+00 : f32
    %121 = vector.broadcast %cst_36 : f32 to vector<1x128xf32>
    %122 = arith.subf %121, %120 : vector<1x128xf32>
    %cst_37 = arith.constant 0.000000e+00 : f32
    %123 = vector.broadcast %cst_37 : f32 to vector<1x128xf32>
    %124 = arith.maximumf %123, %122 : vector<1x128xf32>
    %125 = vector.extract_strided_slice %98 {offsets = [8, 0], sizes = [4, 128], strides = [1, 1]} : vector<32x128xf32> to vector<4x128xf32>
    %126 = vector.broadcast %124 : vector<1x128xf32> to vector<4x128xf32>
    %127 = arith.mulf %125, %126 : vector<4x128xf32>
    %128 = arith.addf %117, %127 : vector<4x128xf32>
    %cst_38 = arith.constant 3.000000e+00 : f32
    %129 = vector.broadcast %cst_38 : f32 to vector<1x128xf32>
    %130 = arith.subf %0, %129 : vector<1x128xf32>
    %131 = math.absf %130 : vector<1x128xf32>
    %cst_39 = arith.constant 1.000000e+00 : f32
    %132 = vector.broadcast %cst_39 : f32 to vector<1x128xf32>
    %133 = arith.subf %132, %131 : vector<1x128xf32>
    %cst_40 = arith.constant 0.000000e+00 : f32
    %134 = vector.broadcast %cst_40 : f32 to vector<1x128xf32>
    %135 = arith.maximumf %134, %133 : vector<1x128xf32>
    %136 = vector.extract_strided_slice %98 {offsets = [12, 0], sizes = [4, 128], strides = [1, 1]} : vector<32x128xf32> to vector<4x128xf32>
    %137 = vector.broadcast %135 : vector<1x128xf32> to vector<4x128xf32>
    %138 = arith.mulf %136, %137 : vector<4x128xf32>
    %139 = arith.addf %128, %138 : vector<4x128xf32>
    %cst_41 = arith.constant 4.000000e+00 : f32
    %140 = vector.broadcast %cst_41 : f32 to vector<1x128xf32>
    %141 = arith.subf %0, %140 : vector<1x128xf32>
    %142 = math.absf %141 : vector<1x128xf32>
    %cst_42 = arith.constant 1.000000e+00 : f32
    %143 = vector.broadcast %cst_42 : f32 to vector<1x128xf32>
    %144 = arith.subf %143, %142 : vector<1x128xf32>
    %cst_43 = arith.constant 0.000000e+00 : f32
    %145 = vector.broadcast %cst_43 : f32 to vector<1x128xf32>
    %146 = arith.maximumf %145, %144 : vector<1x128xf32>
    %147 = vector.extract_strided_slice %98 {offsets = [16, 0], sizes = [4, 128], strides = [1, 1]} : vector<32x128xf32> to vector<4x128xf32>
    %148 = vector.broadcast %146 : vector<1x128xf32> to vector<4x128xf32>
    %149 = arith.mulf %147, %148 : vector<4x128xf32>
    %150 = arith.addf %139, %149 : vector<4x128xf32>
    %cst_44 = arith.constant 5.000000e+00 : f32
    %151 = vector.broadcast %cst_44 : f32 to vector<1x128xf32>
    %152 = arith.subf %0, %151 : vector<1x128xf32>
    %153 = math.absf %152 : vector<1x128xf32>
    %cst_45 = arith.constant 1.000000e+00 : f32
    %154 = vector.broadcast %cst_45 : f32 to vector<1x128xf32>
    %155 = arith.subf %154, %153 : vector<1x128xf32>
    %cst_46 = arith.constant 0.000000e+00 : f32
    %156 = vector.broadcast %cst_46 : f32 to vector<1x128xf32>
    %157 = arith.maximumf %156, %155 : vector<1x128xf32>
    %158 = vector.extract_strided_slice %98 {offsets = [20, 0], sizes = [4, 128], strides = [1, 1]} : vector<32x128xf32> to vector<4x128xf32>
    %159 = vector.broadcast %157 : vector<1x128xf32> to vector<4x128xf32>
    %160 = arith.mulf %158, %159 : vector<4x128xf32>
    %161 = arith.addf %150, %160 : vector<4x128xf32>
    %cst_47 = arith.constant 6.000000e+00 : f32
    %162 = vector.broadcast %cst_47 : f32 to vector<1x128xf32>
    %163 = arith.subf %0, %162 : vector<1x128xf32>
    %164 = math.absf %163 : vector<1x128xf32>
    %cst_48 = arith.constant 1.000000e+00 : f32
    %165 = vector.broadcast %cst_48 : f32 to vector<1x128xf32>
    %166 = arith.subf %165, %164 : vector<1x128xf32>
    %cst_49 = arith.constant 0.000000e+00 : f32
    %167 = vector.broadcast %cst_49 : f32 to vector<1x128xf32>
    %168 = arith.maximumf %167, %166 : vector<1x128xf32>
    %169 = vector.extract_strided_slice %98 {offsets = [24, 0], sizes = [4, 128], strides = [1, 1]} : vector<32x128xf32> to vector<4x128xf32>
    %170 = vector.broadcast %168 : vector<1x128xf32> to vector<4x128xf32>
    %171 = arith.mulf %169, %170 : vector<4x128xf32>
    %172 = arith.addf %161, %171 : vector<4x128xf32>
    %cst_50 = arith.constant 7.000000e+00 : f32
    %173 = vector.broadcast %cst_50 : f32 to vector<1x128xf32>
    %174 = arith.subf %0, %173 : vector<1x128xf32>
    %175 = math.absf %174 : vector<1x128xf32>
    %cst_51 = arith.constant 1.000000e+00 : f32
    %176 = vector.broadcast %cst_51 : f32 to vector<1x128xf32>
    %177 = arith.subf %176, %175 : vector<1x128xf32>
    %cst_52 = arith.constant 0.000000e+00 : f32
    %178 = vector.broadcast %cst_52 : f32 to vector<1x128xf32>
    %179 = arith.maximumf %178, %177 : vector<1x128xf32>
    %180 = vector.extract_strided_slice %98 {offsets = [28, 0], sizes = [4, 128], strides = [1, 1]} : vector<32x128xf32> to vector<4x128xf32>
    %181 = vector.broadcast %179 : vector<1x128xf32> to vector<4x128xf32>
    %182 = arith.mulf %180, %181 : vector<4x128xf32>
    %183 = arith.addf %172, %182 : vector<4x128xf32>
    %c0_53 = arith.constant 0 : index
    %c0_54 = arith.constant 0 : index
    %184 = vector.load %arg3[%c0_53, %c0_54] : memref<4x128xf32, #tpu.memory_space<vmem>>, vector<4x128xf32>
    tpu.vector_store %arg3[%c0_53, %c0_54], %183 {strides = array<i32>} : memref<4x128xf32, #tpu.memory_space<vmem>>, vector<4x128xf32>,
    return
  }
  func.func @transform_0(%arg0: i32) -> (i32, i32) {
    %c0_i32 = arith.constant 0 : i32
    %c0_i32_0 = arith.constant 0 : i32
    return %c0_i32, %arg0 : i32, i32
  }
  func.func @transform_1(%arg0: i32) -> (i32, i32) {
    %c0_i32 = arith.constant 0 : i32
    %c0_i32_0 = arith.constant 0 : i32
    %c0_i32_1 = arith.constant 0 : i32
    return %c0_i32, %c0_i32_0 : i32, i32
  }
  func.func @transform_2(%arg0: i32) -> (i32, i32) {
    %c0_i32 = arith.constant 0 : i32
    %c0_i32_0 = arith.constant 0 : i32
    return %c0_i32, %arg0 : i32, i32
  }
}

</mosaic_0001>

<bundles_post_ra>
// kernel: tpu_custom_call.1
= control target key start
LH: loop header
LB: loop body
LE: loop exit
PB: predicated region body
PF: predicated region fallthrough
CT: control target
= control target key end

     0   :  { %v15_v0 = vlaneseq  ;;  %vm58_vm0 = vcmask 64512   ;;  %s988_s0 = inlined_call_operand.vmem [shape: f32[3,128], index: 0, kind: input, shape index: {}]   ;;  %s989_s1 = inlined_call_operand.vmem [shape: f32[256,8], index: 1, kind: input, shape index: {}]   ;;  %s990_s2 = inlined_call_operand.hbm [shape: f32[4,128], index: 2, kind: output, shape index: {}]  }
   0x1   :  { %v26_v1 = vld [vmem:[%s989_s1] sm:$0xff] }
   0x2   :  { %690 = vmatprep.mubr.msk.f32.mxu0 %vm58_vm0, %v26_v1  ;;  %v42_v2 = vld [vmem:[%s989_s1 + $0x80] sm:$0xff]  ;;  %v788_v3 = vshrl.u32 %v15_v0, 7 }
   0x3   :  { %714 = vmatprep.mubr.msk.f32.mxu1 %vm58_vm0, %v42_v2  ;;  %v608_v4 = vld [vmem:[%s988_s0 + $0x2] ss:$0 sm:$0xff] }
   0x4   :  { %v17_v5 = vcvt.s32.f32 %v788_v3 }
   0x6   :  { %v22_v6 = vsub.f32 %v608_v4, %v17_v5 }
   0x8   :  { %v23_v7 = vand.u32 2147483647, %v22_v6 }
   0xa   :  { %v24_v8 = vsub.f32 1.0, %v23_v7 }
   0xb   :  { %7 = vsyncpa [#allocation3], 0  ;;  %v27_v10 = vld [vmem:[%s989_s1 + $0x8] sm:$0xff]  ;;  %v28_v12 = vld [vmem:[%s989_s1 + $0x10] sm:$0xff]  ;;  %v919_v50 = vsub.s32 0, %v788_v3 }
   0xc   :  { %v25_v9 = vmax.f32 %v24_v8, 0.0  ;;  %v43_v11 = vld [vmem:[%s989_s1 + $0x88] sm:$0xff]  ;;  %v44_v13 = vld [vmem:[%s989_s1 + $0x90] sm:$0xff]  ;;  %v29_v14 = vld [vmem:[%s989_s1 + $0x18] sm:$0xff] }
   0xd   :  { %v45_v15 = vld [vmem:[%s989_s1 + $0x98] sm:$0xff]  ;;  %v30_v16 = vld [vmem:[%s989_s1 + $0x20] sm:$0xff]  ;;  %v31_v18 = vld [vmem:[%s989_s1 + $0x28] sm:$0xff] }
   0xe   :  { %688 = vmatprep.subr.mxu0 %v25_v9  ;;  %738 = vmatprep.subr.mxu1 %v25_v9  ;;  %v46_v17 = vld [vmem:[%s989_s1 + $0xa0] sm:$0xff]  ;;  %v47_v19 = vld [vmem:[%s989_s1 + $0xa8] sm:$0xff]  ;;  %v32_v20 = vld [vmem:[%s989_s1 + $0x30] sm:$0xff] }
   0xf   :  { %689 = vmatpush3.msra.mxu0 %v25_v9  ;;  %739 = vmatpush3.msra.mxu1 %v25_v9  ;;  %v48_v21 = vld [vmem:[%s989_s1 + $0xb0] sm:$0xff]  ;;  %v33_v22 = vld [vmem:[%s989_s1 + $0x38] sm:$0xff]  ;;  %v34_v24 = vld [vmem:[%s989_s1 + $0x40] sm:$0xff] }
  0x10   :  { %691 = vmatmul.mubr.msk.f32.vlgmr.msra.gmra.mrb[0].mxu0 %vm58_vm0, %v27_v10  ;;  %715 = vmatmul.mubr.msk.f32.vlgmr.msra.gmra.mrb[0].mxu1 %vm58_vm0, %v43_v11  ;;  %v49_v23 = vld [vmem:[%s989_s1 + $0xb8] sm:$0xff]  ;;  %v50_v25 = vld [vmem:[%s989_s1 + $0xc0] sm:$0xff]  ;;  %v35_v26 = vld [vmem:[%s989_s1 + $0x48] sm:$0xff] }
  0x11   :  { %693 = vmatprep.mubr.msk.f32.mxu0 %vm58_vm0, %v28_v12  ;;  %717 = vmatprep.mubr.msk.f32.mxu1 %vm58_vm0, %v44_v13  ;;  %v51_v27 = vld [vmem:[%s989_s1 + $0xc8] sm:$0xff]  ;;  %v36_v28 = vld [vmem:[%s989_s1 + $0x50] sm:$0xff]  ;;  %v37_v30 = vld [vmem:[%s989_s1 + $0x58] sm:$0xff] }
  0x12   :  { %v52_v29 = vld [vmem:[%s989_s1 + $0xd0] sm:$0xff]  ;;  %v53_v31 = vld [vmem:[%s989_s1 + $0xd8] sm:$0xff]  ;;  %v38_v32 = vld [vmem:[%s989_s1 + $0x60] sm:$0xff] }
  0x13   :  { %v54_v33 = vld [vmem:[%s989_s1 + $0xe0] sm:$0xff]  ;;  %v39_v34 = vld [vmem:[%s989_s1 + $0x68] sm:$0xff]  ;;  %v40_v36 = vld [vmem:[%s989_s1 + $0x70] sm:$0xff] }
  0x14   :  { %694 = vmatmul.mubr.msk.f32.gmra.mrb[2].mxu0 %vm58_vm0, %v29_v14  ;;  %718 = vmatmul.mubr.msk.f32.gmra.mrb[2].mxu1 %vm58_vm0, %v45_v15  ;;  %v55_v35 = vld [vmem:[%s989_s1 + $0xe8] sm:$0xff]  ;;  %v56_v37 = vld [vmem:[%s989_s1 + $0xf0] sm:$0xff]  ;;  %v41_v38 = vld [vmem:[%s989_s1 + $0x78] sm:$0xff] }
  0x15   :  { %696 = vmatprep.mubr.msk.f32.mxu0 %vm58_vm0, %v30_v16  ;;  %720 = vmatprep.mubr.msk.f32.mxu1 %vm58_vm0, %v46_v17  ;;  %v57_v39 = vld [vmem:[%s989_s1 + $0xf8] sm:$0xff]  ;;  %v13_v40 = vld [vmem:[%s988_s0 + $0x1] sm:$0x1] }
  0x16   :  { %v644_v41 = vadd.f32 -4.0, %v13_v40  ;;  %v380_v42 = vand.u32 2147483647, %v13_v40  ;;  %v641_v44 = vadd.f32 -1.0, %v13_v40  ;;  %v645_v45 = vadd.f32 -5.0, %v13_v40 }
  0x17   :  { %v642_v55 = vadd.f32 -2.0, %v13_v40  ;;  %v646_v58 = vadd.f32 -6.0, %v13_v40  ;;  %v643_v12 = vadd.f32 -3.0, %v13_v40 }
  0x18   :  { %697 = vmatmul.mubr.msk.f32.gmra.mrb[4].mxu0 %vm58_vm0, %v31_v18  ;;  %721 = vmatmul.mubr.msk.f32.gmra.mrb[4].mxu1 %vm58_vm0, %v47_v19  ;;  %v440_v43 = vand.u32 2147483647, %v644_v41  ;;  %v381_v46 = vsub.f32 1.0, %v380_v42  ;;  %v392_v48 = vand.u32 2147483647, %v641_v44  ;;  %v647_v18 = vadd.f32 -7.0, %v13_v40 }
  0x19   :  { %699 = vmatprep.mubr.msk.f32.mxu0 %vm58_vm0, %v32_v20  ;;  %723 = vmatprep.mubr.msk.f32.mxu1 %vm58_vm0, %v48_v21  ;;  %v456_v49 = vand.u32 2147483647, %v645_v45  ;;  %v408_v63 = vand.u32 2147483647, %v642_v55  ;;  %v472_v4 = vand.u32 2147483647, %v646_v58 }
  0x1a   :  { %v441_v47 = vsub.f32 1.0, %v440_v43  ;;  %v382_v51 = vmax.f32 %v381_v46, 0.0  ;;  %v393_v53 = vsub.f32 1.0, %v392_v48 }
  0x1b   :  { %v457_v54 = vsub.f32 1.0, %v456_v49  ;;  %v409_v11 = vsub.f32 1.0, %v408_v63  ;;  %v473_v17 = vsub.f32 1.0, %v472_v4 }
  0x1c   :  { %700 = vmatmul.mubr.msk.f32.gmra.mrb[6].mxu0 %vm58_vm0, %v33_v22  ;;  %724 = vmatmul.mubr.msk.f32.gmra.mrb[6].mxu1 %vm58_vm0, %v49_v23  ;;  %v442_v52 = vmax.f32 %v441_v47, 0.0  ;;  %v386_v56 = vrot.slane %v382_v51, %v919_v50  ;;  %v394_v61 = vmax.f32 %v393_v53, 0.0 }
  0x1d   :  { %702 = vmatprep.mubr.msk.f32.mxu0 %vm58_vm0, %v34_v24  ;;  %726 = vmatprep.mubr.msk.f32.mxu1 %vm58_vm0, %v50_v25  ;;  %v458_v62 = vmax.f32 %v457_v54, 0.0  ;;  %v410_v23 = vmax.f32 %v409_v11, 0.0  ;;  %v424_v24 = vand.u32 2147483647, %v643_v12 }
  0x1e   :  { %v446_v57 = vrot.slane %v442_v52, %v919_v50  ;;  %v398_v8 = vrot.slane %v394_v61, %v919_v50 }
  0x1f   :  { %v462_v10 = vrot.slane %v458_v62, %v919_v50 }
  0x20   :  { %703 = vmatmul.mubr.msk.f32.gmra.mrb[8].mxu0 %vm58_vm0, %v35_v26  ;;  %727 = vmatmul.mubr.msk.f32.gmra.mrb[8].mxu1 %vm58_vm0, %v51_v27 }
  0x21   :  { %705 = vmatprep.mubr.msk.f32.mxu0 %vm58_vm0, %v36_v28  ;;  %729 = vmatprep.mubr.msk.f32.mxu1 %vm58_vm0, %v52_v29  ;;  %v474_v29 = vmax.f32 %v473_v17, 0.0 }
  0x23   :  { %v478_v44 = vrot.slane %v474_v29, %v919_v50 }
  0x24   :  { %706 = vmatmul.mubr.msk.f32.gmra.mrb[10].mxu0 %vm58_vm0, %v37_v30  ;;  %730 = vmatmul.mubr.msk.f32.gmra.mrb[10].mxu1 %vm58_vm0, %v53_v31  ;;  %v488_v30 = vand.u32 2147483647, %v647_v18 }
  0x25   :  { %708 = vmatprep.mubr.msk.f32.mxu0 %vm58_vm0, %v38_v32  ;;  %732 = vmatprep.mubr.msk.f32.mxu1 %vm58_vm0, %v54_v33 }
  0x26   :  { %v489_v45 = vsub.f32 1.0, %v488_v30 }
  0x28   :  { %709 = vmatmul.mubr.msk.f32.gmra.mrb[12].mxu0 %vm58_vm0, %v39_v34  ;;  %733 = vmatmul.mubr.msk.f32.gmra.mrb[12].mxu1 %vm58_vm0, %v55_v35  ;;  %v12_v34 = vld [vmem:[%s988_s0] sm:$0x1]  ;;  %v490_v61 = vmax.f32 %v489_v45, 0.0  ;;  %s765_s0 = smov [#allocation2]  }
  0x29   :  { %711 = vmatprep.mubr.msk.f32.mxu0 %vm58_vm0, %v40_v36  ;;  %735 = vmatprep.mubr.msk.f32.mxu1 %vm58_vm0, %v56_v37  ;;  %v414_v37 = vrot.slane %v410_v23, %v919_v50  ;;  %v649_v48 = vadd.f32 -2.0, %v12_v34  ;;  %v650_v51 = vadd.f32 -3.0, %v12_v34  ;;  %v648_v52 = vadd.f32 -1.0, %v12_v34  ;;  %s600_s22 = sshll.u32 %s765_s0, 4  ;;  %s601_s22 = int_to_ptr.vmem [resolvable:$true] %s600_s22 }
  0x2a   :  { %v503_v4 = vand.u32 2147483647, %v12_v34  ;;  %v653_v11 = vadd.f32 -6.0, %v12_v34  ;;  %v654_v12 = vadd.f32 -7.0, %v12_v34  ;;  %v494_v18 = vrot.slane %v490_v61, %v919_v50  ;;  %s741_s23 = scalar_lea.vmem %s601_s22, 64  ;;  %p746_p1 = scmp.lt.s32.totalorder %s601_s22, %s601_s22 }
  0x2b   :  { %p742_p0 = scmp.ne.s32.totalorder %s601_s22, %s741_s23  ;;  %p747_p2 = scmp.lt.s32.totalorder %s741_s23, %s741_s23 }
  0x2c   :  { %712 = vmatmul.mubr.msk.f32.gmra.mrb[14].mxu0 %vm58_vm0, %v41_v38  ;;  %736 = vmatmul.mubr.msk.f32.gmra.mrb[14].mxu1 %vm58_vm0, %v57_v39  ;;  %v425_v39 = vsub.f32 1.0, %v424_v24  ;;  %v652_v24 = vadd.f32 -5.0, %v12_v34 }
  0x2d   :  { %p748_p3 = por %p747_p2, %p746_p1 }
  0x2f   :  { %p749_p4 = pnand %p748_p3, %p742_p0 }
  0xe3   :  { %v692_v59 = vpop.f32.mrb[0].mxu0  ;;  %v716_v60 = vpop.f32.mrb[0].mxu1 }
  0xe4   :  { %v388_v0 = vmul.f32 %v692_v59, %v386_v56  ;;  %v221_v1 = vpop.f32.mrb[1].mxu0  ;;  %v923_v2 = vmul.f32 %v716_v60, %v446_v57  ;;  %v301_v3 = vpop.f32.mrb[1].mxu1 }
  0xe5   :  { %v387_v5 = vmul.f32 %v386_v56, %v221_v1  ;;  %v925_v6 = vmul.f32 %v446_v57, %v301_v3  ;;  %v535_v3 = vand.u32 2147483647, %v650_v51 }
  0xe7   :  { %v695_v7 = vpop.f32.mrb[2].mxu0  ;;  %v719_v9 = vpop.f32.mrb[2].mxu1 }
  0xe8   :  { %v390_v13 = vmul.f32 %v695_v7, %v386_v56  ;;  %v231_v14 = vpop.f32.mrb[3].mxu0  ;;  %v929_v15 = vmul.f32 %v719_v9, %v446_v57  ;;  %v311_v16 = vpop.f32.mrb[3].mxu1 }
  0xe9   :  { %v389_v19 = vmul.f32 %v386_v56, %v231_v14  ;;  %v931_v20 = vmul.f32 %v446_v57, %v311_v16  ;;  %v426_v56 = vmax.f32 %v425_v39, 0.0 }
  0xeb   :  { %v698_v21 = vpop.f32.mrb[4].mxu0  ;;  %v722_v22 = vpop.f32.mrb[4].mxu1  ;;  %v430_v9 = vrot.slane %v426_v56, %v919_v50 }
  0xec   :  { %v400_v25 = vmul.f32 %v698_v21, %v398_v8  ;;  %v241_v26 = vpop.f32.mrb[5].mxu0  ;;  %v933_v27 = vmul.f32 %v722_v22, %v462_v10  ;;  %v321_v28 = vpop.f32.mrb[5].mxu1 }
  0xed   :  { %v399_v31 = vmul.f32 %v398_v8, %v241_v26  ;;  %v935_v32 = vmul.f32 %v462_v10, %v321_v28  ;;  %v536_v26 = vsub.f32 1.0, %v535_v3  ;;  %v504_v28 = vsub.f32 1.0, %v503_v4 }
  0xee   :  { %v404_v33 = vadd.f32 %v400_v25, %v388_v0  ;;  %v525_v0 = vand.u32 2147483647, %v649_v48 }
  0xef   :  { %v403_v35 = vadd.f32 %v399_v31, %v387_v5  ;;  %v701_v36 = vpop.f32.mrb[6].mxu0  ;;  %v725_v38 = vpop.f32.mrb[6].mxu1  ;;  %v512_v5 = vand.u32 2147483647, %v648_v52 }
  0xf0   :  { %v402_v40 = vmul.f32 %v701_v36, %v398_v8  ;;  %v251_v41 = vpop.f32.mrb[7].mxu0  ;;  %v941_v42 = vmul.f32 %v725_v38, %v462_v10  ;;  %v331_v43 = vpop.f32.mrb[7].mxu1  ;;  %v526_v23 = vsub.f32 1.0, %v525_v0  ;;  %v581_v36 = vand.u32 2147483647, %v654_v12 }
  0xf1   :  { %v401_v46 = vmul.f32 %v398_v8, %v251_v41  ;;  %v944_v47 = vmul.f32 %v462_v10, %v331_v43  ;;  %v513_v29 = vsub.f32 1.0, %v512_v5 }
  0xf2   :  { %v406_v49 = vadd.f32 %v402_v40, %v390_v13  ;;  %v527_v48 = vmax.f32 %v526_v23, 0.0  ;;  %v582_v56 = vsub.f32 1.0, %v581_v36 }
  0xf3   :  { %v405_v53 = vadd.f32 %v401_v46, %v389_v19  ;;  %v704_v54 = vpop.f32.mrb[8].mxu0  ;;  %v728_v55 = vpop.f32.mrb[8].mxu1  ;;  %v651_v19 = vadd.f32 -4.0, %v12_v34  ;;  %v537_v34 = vmax.f32 %v536_v26, 0.0 }
  0xf4   :  { %v416_v57 = vmul.f32 %v704_v54, %v414_v37  ;;  %v261_v58 = vpop.f32.mrb[9].mxu0  ;;  %v946_v59 = vmul.f32 %v728_v55, %v478_v44  ;;  %v341_v60 = vpop.f32.mrb[9].mxu1  ;;  %v514_v54 = vmax.f32 %v513_v29, 0.0 }
  0xf5   :  { %v415_v62 = vmul.f32 %v414_v37, %v261_v58  ;;  %v948_v63 = vmul.f32 %v478_v44, %v341_v60  ;;  %v548_v43 = vand.u32 2147483647, %v651_v19 }
  0xf6   :  { %v420_v1 = vadd.f32 %v416_v57, %v404_v33 }
  0xf7   :  { %v419_v7 = vadd.f32 %v415_v62, %v403_v35  ;;  %v707_v8 = vpop.f32.mrb[10].mxu0  ;;  %v731_v10 = vpop.f32.mrb[10].mxu1  ;;  %v571_v35 = vand.u32 2147483647, %v653_v11  ;;  %v549_v0 = vsub.f32 1.0, %v548_v43  ;;  %v541_v11 = vrot.slane %v537_v34, %v919_v50 }
  0xf8   :  { %v418_v13 = vmul.f32 %v707_v8, %v414_v37  ;;  %v271_v14 = vpop.f32.mrb[11].mxu0  ;;  %v951_v16 = vmul.f32 %v731_v10, %v478_v44  ;;  %v351_v17 = vpop.f32.mrb[11].mxu1  ;;  %v531_v10 = vrot.slane %v527_v48, %v919_v50 }
  0xf9   :  { %v417_v21 = vmul.f32 %v414_v37, %v271_v14  ;;  %v954_v22 = vmul.f32 %v478_v44, %v351_v17  ;;  %v558_v44 = vand.u32 2147483647, %v652_v24  ;;  %v572_v55 = vsub.f32 1.0, %v571_v35 }
  0xfa   :  { %v422_v25 = vadd.f32 %v418_v13, %v406_v49  ;;  %v505_v49 = vmax.f32 %v504_v28, 0.0  ;;  %v583_v14 = vmax.f32 %v582_v56, 0.0 }
  0xfb   :  { %v421_v30 = vadd.f32 %v417_v21, %v405_v53  ;;  %v710_v31 = vpop.f32.mrb[12].mxu0  ;;  %v734_v33 = vpop.f32.mrb[12].mxu1  ;;  %v559_v5 = vsub.f32 1.0, %v558_v44  ;;  %v573_v13 = vmax.f32 %v572_v55, 0.0  ;;  %v518_v21 = vrot.slane %v514_v54, %v919_v50 }
  0xfc   :  { %v432_v38 = vmul.f32 %v710_v31, %v430_v9  ;;  %v281_v39 = vpop.f32.mrb[13].mxu0  ;;  %v496_v40 = vmul.f32 %v734_v33, %v494_v18  ;;  %v361_v41 = vpop.f32.mrb[13].mxu1 }
  0xfd   :  { %v431_v45 = vmul.f32 %v430_v9, %v281_v39  ;;  %v495_v37 = vmul.f32 %v494_v18, %v361_v41  ;;  %v560_v23 = vmax.f32 %v559_v5, 0.0  ;;  %v577_v26 = vrot.slane %v573_v13, %v919_v50 }
  0xfe   :  { %v436_v46 = vadd.f32 %v432_v38, %v420_v1 }
  0xff   :  { %v435_v51 = vadd.f32 %v431_v45, %v419_v7  ;;  %v713_v52 = vpop.f32.mrb[14].mxu0  ;;  %v737_v53 = vpop.f32.mrb[14].mxu1  ;;  %v564_v35 = vrot.slane %v560_v23, %v919_v50 }
 0x100   :  { %v452_v57 = vadd.f32 %v923_v2, %v436_v46  ;;  %v434_v58 = vmul.f32 %v713_v52, %v430_v9  ;;  %v291_v60 = vpop.f32.mrb[15].mxu0  ;;  %v498_v61 = vmul.f32 %v737_v53, %v494_v18  ;;  %v371_v62 = vpop.f32.mrb[15].mxu1 }
 0x101   :  { %v451_v3 = vadd.f32 %v925_v6, %v435_v51  ;;  %v433_v4 = vmul.f32 %v430_v9, %v291_v60  ;;  %v497_v1 = vmul.f32 %v494_v18, %v371_v62  ;;  %v509_v6 = vrot.slane %v505_v49, %v919_v50 }
 0x102   :  { %v438_v8 = vadd.f32 %v434_v58, %v422_v25  ;;  %v468_v7 = vadd.f32 %v933_v27, %v452_v57  ;;  %v550_v9 = vmax.f32 %v549_v0, 0.0 }
 0x103   :  { %v437_v12 = vadd.f32 %v433_v4, %v421_v30  ;;  %v467_v2 = vadd.f32 %v935_v32, %v451_v3 }
 0x104   :  { %v454_v17 = vadd.f32 %v929_v15, %v438_v8  ;;  %v484_v19 = vadd.f32 %v946_v59, %v468_v7  ;;  %v587_v15 = vrot.slane %v583_v14, %v919_v50 }
 0x105   :  { %v453_v18 = vadd.f32 %v931_v20, %v437_v12  ;;  %v483_v27 = vadd.f32 %v948_v63, %v467_v2  ;;  %v554_v20 = vrot.slane %v550_v9, %v919_v50 }
 0x106   :  { %v500_v24 = vadd.f32 %v496_v40, %v484_v19  ;;  %v470_v25 = vadd.f32 %v941_v42, %v454_v17 }
 0x107   :  { %v499_v32 = vadd.f32 %v495_v37, %v483_v27  ;;  %v469_v59 = vadd.f32 %v944_v47, %v453_v18 }
 0x108   :  { %v532_v28 = vmul.f32 %v531_v10, %v500_v24  ;;  %v542_v29 = vmul.f32 %v541_v11, %v500_v24  ;;  %v486_v30 = vadd.f32 %v951_v16, %v470_v25 }
 0x109   :  { %v510_v63 = vmul.f32 %v509_v6, %v499_v32  ;;  %v519_v31 = vmul.f32 %v518_v21, %v499_v32  ;;  %v485_v33 = vadd.f32 %v954_v22, %v469_v59 }
 0x10a   :  { %v502_v42 = vadd.f32 %v498_v61, %v486_v30  ;;  %v544_v45 = vrot.slane %v542_v29, 4 }
 0x10b   :  { %v521_v36 = vrot.slane %v519_v31, 4  ;;  %v501_v38 = vadd.f32 %v497_v1, %v485_v33 }
 0x10c   :  { %v578_v39 = vmul.f32 %v577_v26, %v502_v42  ;;  %v588_v40 = vmul.f32 %v587_v15, %v502_v42 }
 0x10d   :  { %v523_v41 = vadd.f32 %v521_v36, %v510_v63  ;;  %v555_v43 = vmul.f32 %v554_v20, %v501_v38  ;;  %v565_v47 = vmul.f32 %v564_v35, %v501_v38 }
 0x10e   :  { %v590_v22 = vrot.slane %v588_v40, 4 }
 0x10f   :  { %v533_v37 = vadd.f32 %v532_v28, %v523_v41  ;;  %v567_v46 = vrot.slane %v565_v47, 4 }
 0x111   :  { %v546_v44 = vadd.f32 %v544_v45, %v533_v37 }
 0x113   :  { %v556_v16 = vadd.f32 %v555_v43, %v546_v44 }
 0x115   :  { %v569_v48 = vadd.f32 %v567_v46, %v556_v16 }
 0x117   :  { %v579_v34 = vadd.f32 %v578_v39, %v569_v48 }
 0x119   :  { %v592_v49 = vadd.f32 %v590_v22, %v579_v34 }
 0x11b   :  { %593 = vst [vmem:[#allocation2] sm:$0xf] %v592_v49 }
 0x11c   :  { %752 = shalt.err (!%p749_p4)
}
 0x11d   :  { %s753_s26 = scalar_lea.hbm %s990_s2, 64 }
 0x11e   :  { %p754_p5 = scmp.ne.s32.totalorder %s990_s2, %s753_s26  ;;  %p757_p6 = scmp.lt.u32.totalorder %s753_s26, %s990_s2 }
 0x120   :  { %p759_p7 = pnand %p757_p6, %p754_p5 }
 0x122   :  { %762 = shalt.err (!%p759_p7)
}
 0x123   :  { %603 = dma.vmem_to_hbm [thread:$0]  %s601_s22, 64, %s990_s2, [#allocation3]  }
 0x124   :  { %763 = dma.done.wait [#allocation3], 64  }
 0x125   :  { %764 = vsyncadd [#allocation3], 4294967232 }
 0x126   :  { %607 = vsyncpa [#allocation3], 1 }

</bundles_post_ra>
